<compile_context>
chip_gen: v5e
topology: v5e:2x2
jax: 0.10.0
libtpu: 0.0.40
codegen_flags: <defaults>
</compile_context>

<pallas_src>
import jax
import jax.numpy as jnp
from jax.experimental import pallas as pl
from jax.experimental.pallas import tpu as pltpu


# ----------------------------------------------------------------------------
# Glue: 1-D bilinear interpolation matrix matching PyTorch F.interpolate
# (mode='bilinear', align_corners=False).
# ----------------------------------------------------------------------------
def _bilinear_matrix(out_size: int, in_size: int) -> jnp.ndarray:
    """Returns M (out_size, in_size) s.t. y = M @ x is the 1-D bilinear resize."""
    scale = in_size / out_size
    dst = jnp.arange(out_size, dtype=jnp.float32)
    src = (dst + 0.5) * scale - 0.5
    src = jnp.maximum(src, 0.0)               # PyTorch clamps negative src to 0
    x0 = jnp.floor(src).astype(jnp.int32)
    x0 = jnp.minimum(x0, in_size - 1)
    x1 = jnp.minimum(x0 + 1, in_size - 1)
    frac = src - x0.astype(jnp.float32)
    rows = jnp.arange(out_size)
    m = jnp.zeros((out_size, in_size), dtype=jnp.float32)
    m = m.at[rows, x0].add(1.0 - frac)
    m = m.at[rows, x1].add(frac)
    return m


# ----------------------------------------------------------------------------
# Pallas kernel: lane-dense elementwise scale + ReLU.
#   x_ref: (TM, HW), s_ref: (1, HW) prescaled weight row.
# ----------------------------------------------------------------------------
def _center_bias_kernel(x_ref, s_ref, o_ref):
    o_ref[...] = jnp.maximum(x_ref[...] * s_ref[...], 0.0).astype(o_ref.dtype)


def center_bias_forward(
    x: jnp.ndarray,
    weight_param: jnp.ndarray,
    *,
    target_block_bytes: int = 2 * 1024 * 1024,
) -> jnp.ndarray:
    """x: (N, C, H, W) f32; weight_param: (1, 1, h0, w0) f32 (module parameter)."""
    N, C, H, W = x.shape
    h0, w0 = weight_param.shape[2], weight_param.shape[3]
    NC, HW = N * C, H * W

    # --- tiny precompute in JAX: bilinear resize + normalization -------------
    mh = _bilinear_matrix(H, h0)                                  # (H, h0)
    mw = _bilinear_matrix(W, w0)                                  # (W, w0)
    w_interp = mh @ weight_param[0, 0].astype(jnp.float32) @ mw.T  # (H, W)
    scale = (w_interp * (jnp.float32(HW) / jnp.sum(w_interp)))     # w/sum(w)*H*W
    scale_row = scale.reshape(1, HW).astype(x.dtype)               # (1, H*W)

    # --- row-tile sizing: ~target_block_bytes per block, sublane-aligned -----
    bytes_per_row = HW * x.dtype.itemsize
    tm = max(1, target_block_bytes // max(1, bytes_per_row))
    tm = int(min(tm, NC))
    if tm < NC:
        tm = max(8, (tm // 8) * 8)     # keep (8, ...) sublane alignment
        tm = min(tm, NC)
    grid = (pl.cdiv(NC, tm),)

    x2 = x.reshape(NC, HW)

    out2 = pl.pallas_call(
        _center_bias_kernel,
        out_shape=jax.ShapeDtypeStruct((NC, HW), x.dtype),
        grid_spec=pltpu.PrefetchScalarGridSpec(
            num_scalar_prefetch=0,
            grid=grid,
            in_specs=[
                pl.BlockSpec((tm, HW), lambda i: (i, 0)),
                pl.BlockSpec((1, HW), lambda i: (0, 0)),
            ],
            out_specs=pl.BlockSpec((tm, HW), lambda i: (i, 0)),
        ),
        compiler_params=pltpu.CompilerParams(
            dimension_semantics=("parallel",),
        ),
    )(x2, scale_row)

    return out2.reshape(N, C, H, W)


# ----------------------------------------------------------------------------
# Pure-JAX reference (same math) for a correctness check.
# ----------------------------------------------------------------------------
def _reference(x, weight_param):
    N, C, H, W = x.shape
    h0, w0 = weight_param.shape[2], weight_param.shape[3]
    mh = _bilinear_matrix(H, h0)
    mw = _bilinear_matrix(W, w0)
    w = mh @ weight_param[0, 0] @ mw.T
    scale = w / jnp.sum(w) * (H * W)
    return jnp.maximum(x * scale[None, None, :, :], 0.0)


if __name__ == "__main__":
    key = jax.random.PRNGKey(0)
    N, C, H, W = 2, 4, 16, 16
    x = jax.random.normal(key, (N, C, H, W), dtype=jnp.float32)

    # Parameter exactly as in the module's __init__: ones of shape (1, 1, 20, 20).
    weight_param = jnp.ones((1, 1, 20, 20), dtype=jnp.float32)

    out = center_bias_forward(x, weight_param)
    out = jax.block_until_ready(out)

    ref = _reference(x, weight_param)
    assert out.shape == x.shape and out.dtype == x.dtype
    assert jnp.allclose(out, ref, atol=1e-5, rtol=1e-5)

    print("KERNEL_OK")
</pallas_src>

<mosaic_0001>
module attributes {stable_mosaic.version = 11 : i64} {
  func.func @_center_bias_kernel(%arg0: i32, %arg1: memref<8x256xf32, #tpu.memory_space<vmem>>, %arg2: memref<1x256xf32, #tpu.memory_space<vmem>>, %arg3: memref<8x256xf32, #tpu.memory_space<vmem>>) attributes {dimension_semantics = [#tpu.dimension_semantics<parallel>], iteration_bounds = array<i64: 1>, scalar_prefetch = 0 : i64, scratch_operands = 0 : i64, tpu.core_type = #tpu.core_type<tc>, window_params = [{transform_indices = @transform_0, window_bounds = array<i64: 8, 256>}, {pipeline_mode = #tpu.pipeline_mode<synchronous>, transform_indices = @transform_1, window_bounds = array<i64: 1, 256>}, {transform_indices = @transform_2, window_bounds = array<i64: 8, 256>}]} {
    %c0 = arith.constant 0 : index
    %c0_0 = arith.constant 0 : index
    %0 = vector.load %arg1[%c0, %c0_0] : memref<8x256xf32, #tpu.memory_space<vmem>>, vector<8x256xf32>
    %c0_1 = arith.constant 0 : index
    %c0_2 = arith.constant 0 : index
    %1 = vector.load %arg2[%c0_1, %c0_2] : memref<1x256xf32, #tpu.memory_space<vmem>>, vector<1x256xf32>
    %2 = vector.broadcast %1 : vector<1x256xf32> to vector<8x256xf32>
    %3 = arith.mulf %0, %2 : vector<8x256xf32>
    %cst = arith.constant 0.000000e+00 : f32
    %4 = vector.broadcast %cst : f32 to vector<8x256xf32>
    %5 = arith.maximumf %3, %4 : vector<8x256xf32>
    %c0_3 = arith.constant 0 : index
    %c0_4 = arith.constant 0 : index
    %6 = vector.load %arg3[%c0_3, %c0_4] : memref<8x256xf32, #tpu.memory_space<vmem>>, vector<8x256xf32>
    tpu.vector_store %arg3[%c0_3, %c0_4], %5 {strides = array<i32>} : memref<8x256xf32, #tpu.memory_space<vmem>>, vector<8x256xf32>,
    return
  }
  func.func @transform_0(%arg0: i32) -> (i32, i32) {
    %c0_i32 = arith.constant 0 : i32
    %c0_i32_0 = arith.constant 0 : i32
    return %arg0, %c0_i32 : i32, i32
  }
  func.func @transform_1(%arg0: i32) -> (i32, i32) {
    %c0_i32 = arith.constant 0 : i32
    %c0_i32_0 = arith.constant 0 : i32
    %c0_i32_1 = arith.constant 0 : i32
    return %c0_i32, %c0_i32_0 : i32, i32
  }
  func.func @transform_2(%arg0: i32) -> (i32, i32) {
    %c0_i32 = arith.constant 0 : i32
    %c0_i32_0 = arith.constant 0 : i32
    return %arg0, %c0_i32 : i32, i32
  }
}

</mosaic_0001>

<bundles_post_ra>
// kernel: tpu_custom_call.1
= control target key start
LH: loop header
LB: loop body
LE: loop exit
PB: predicated region body
PF: predicated region fallthrough
CT: control target
= control target key end

     0   :  { %7 = vsyncpa [#allocation3], 0  ;;  %s180_s0 = inlined_call_operand.hbm [shape: f32[8,256], index: 0, kind: input, shape index: {}]   ;;  %s181_s1 = inlined_call_operand.hbm [shape: f32[1,256], index: 1, kind: input, shape index: {}]   ;;  %s182_s2 = inlined_call_operand.hbm [shape: f32[8,256], index: 2, kind: output, shape index: {}]  }
   0x1   :  { %8 = vsyncpa [#allocation6], 0 }
   0x2   :  { %9 = vsyncpa [#allocation4], 0  ;;  %s15_s11 = sshll.u32 %s180_s0, 4  ;;  %s153_s12 = smov [#allocation2]   ;;  %s16_s11 = int_to_ptr.hbm [resolvable:$true] %s15_s11 }
   0x3   :  { %s17_s13 = sshll.u32 %s153_s12, 4  ;;  %s26_s16 = sshll.u32 %s181_s1, 4  ;;  %s18_s13 = int_to_ptr.vmem [resolvable:$true] %s17_s13  ;;  %s27_s16 = int_to_ptr.hbm [resolvable:$true] %s26_s16 }
   0x4   :  { %20 = dma.hbm_to_vmem [thread:$0]  %s16_s11, 256, %s18_s13, [#allocation3]  }
   0x5   :  { %s154_s17 = smov [#allocation5]  }
   0x6   :  { %s28_s18 = sshll.u32 %s154_s17, 4  ;;  %s29_s18 = int_to_ptr.vmem [resolvable:$true] %s28_s18 }
   0x7   :  { %31 = dma.hbm_to_vmem [thread:$0]  %s27_s16, 32, %s29_s18, [#allocation6]  }
   0x8   :  { %147 = dma.done.wait [#allocation3], 256  }
   0x9   :  { %148 = vsyncadd [#allocation3], 4294967040 }
   0xa   :  { %149 = dma.done.wait [#allocation6], 32  }
   0xb   :  { %150 = vsyncadd [#allocation6], 4294967264  ;;  %v40_v0 = vld [vmem:[#allocation2] sm:$0xff]  ;;  %v42_v1 = vld [vmem:[#allocation5] sm:$0x3]  ;;  %s155_s0 = smov [#allocation7]  }
   0xc   :  { %v41_v2 = vld [vmem:[#allocation2 + $0x8] sm:$0xff]  ;;  %v44_v3 = vperm.slane %v42_v1, 0  ;;  %v45_v4 = vperm.slane %v42_v1, 1  ;;  %s59_s19 = sshll.u32 %s155_s0, 4  ;;  %s61_s21 = sshll.u32 %s182_s2, 4  ;;  %s60_s19 = int_to_ptr.vmem [resolvable:$true] %s59_s19  ;;  %s62_s21 = int_to_ptr.hbm [resolvable:$true] %s61_s21 }
   0xe   :  { %v48_v5 = vmul.f32 %v44_v3, %v40_v0  ;;  %v49_v6 = vmul.f32 %v45_v4, %v41_v2 }
  0x10   :  { %v50_v7 = vmax.f32 %v48_v5, 0.0  ;;  %v51_v8 = vmax.f32 %v49_v6, 0.0 }
  0x12   :  { %52 = vst [vmem:[#allocation7] sm:$0xff] %v50_v7 }
  0x13   :  { %53 = vst [vmem:[#allocation7 + $0x8] sm:$0xff] %v51_v8 }
  0x14   :  { %64 = dma.vmem_to_hbm [thread:$0]  %s60_s19, 256, %s62_s21, [#allocation4]  }
  0x15   :  { %151 = dma.done.wait [#allocation4], 256  }
  0x16   :  { %152 = vsyncadd [#allocation4], 4294967040 }
  0x17   :  { %69 = vsyncpa [#allocation3], 1 }
  0x18   :  { %70 = vsyncpa [#allocation6], 1 }
  0x19   :  { %71 = vsyncpa [#allocation4], 1 }

</bundles_post_ra>
